<compile_context>
chip_gen: v7x
topology: tpu7x:2x2x1
jax: 0.10.0
libtpu: 0.0.40
codegen_flags: <defaults>
</compile_context>

<pallas_src>
import functools

import numpy as np

import jax
import jax.numpy as jnp
from jax.experimental import pallas as pl
from jax.experimental.pallas import tpu as pltpu


# ---------------------------------------------------------------------------
# Activations (computed in float32, matching torch `activation_fn(x.float())`)
# ---------------------------------------------------------------------------

def _silu(x):
    return x * jax.nn.sigmoid(x)


def _gelu_exact(x):
    # torch.nn.functional.gelu default is the exact erf-based form.
    return jax.nn.gelu(x, approximate=False)


def _gelu_tanh(x):
    # EUP-friendly approximate form (perf feedback); opt-in, numerics differ.
    return jax.nn.gelu(x, approximate=True)


_ACTS = {"swish": _silu, "gelu": _gelu_exact, "gelu_tanh": _gelu_tanh}


# ---------------------------------------------------------------------------
# Helpers
# ---------------------------------------------------------------------------

def _round_up(x, m):
    return ((x + m - 1) // m) * m


def _vmem_capacity_bytes():
    """Per-core VMEM capacity; conservative 64 MiB fallback (v7x per-TC)."""
    try:
        info = pltpu.get_tpu_info()
        cap = int(getattr(info, "vmem_capacity_bytes"))
        if cap > 0:
            return cap
    except Exception:
        pass
    return 64 * 1024 * 1024


def _vmem_footprint(tm, tf, E, x_bytes, w_bytes, out_bytes):
    """Double-buffered working set of one grid step."""
    fp = 2 * tm * E * x_bytes            # x tile          (double-buffered)
    fp += 2 * E * (2 * tf) * w_bytes     # packed fc1|gate (double-buffered)
    fp += 2 * tf * E * w_bytes           # W2^T tile       (double-buffered)
    fp += 2 * tm * E * out_bytes         # output tile     (double-buffered)
    fp += tm * E * 4                     # f32 accumulator scratch
    return fp


def _choose_tf(ffn_dim):
    """F-tile: multiple of 8 (lane-aligned 128/256 for real model sizes)."""
    if ffn_dim <= 256:
        return max(8, _round_up(ffn_dim, 8))
    return 256 if ffn_dim >= 1024 else 128


def pack_glu_weights(w_fc1, w_gate, w_fc2, tf, compute_dtype):
    """Pre-transpose / pre-cast / pre-pack the GLU weights once.

    Returns:
      w1g : (nj, E, 2*tf)  -- per F-tile [W1^T | Wg^T] blocks (one DMA / one dot)
      w2t : (Fp, E)        -- fc2 weight transposed, F zero-padded to nj*tf
    (Zero padding along F is exact: act(0) * 0 == 0 for silu/gelu, and padded
     W2^T rows contribute nothing to the accumulation.)
    """
    F_dim, E = w_fc1.shape
    Fp = _round_up(F_dim, tf)
    w1t = jnp.transpose(w_fc1).astype(compute_dtype)   # (E, F)
    wgt = jnp.transpose(w_gate).astype(compute_dtype)  # (E, F)
    w2t = jnp.transpose(w_fc2).astype(compute_dtype)   # (F, E)
    if Fp != F_dim:
        pad = Fp - F_dim
        w1t = jnp.pad(w1t, ((0, 0), (0, pad)))
        wgt = jnp.pad(wgt, ((0, 0), (0, pad)))
        w2t = jnp.pad(w2t, ((0, pad), (0, 0)))
    nj = Fp // tf
    w1b = w1t.reshape(E, nj, tf).transpose(1, 0, 2)    # (nj, E, tf)
    wgb = wgt.reshape(E, nj, tf).transpose(1, 0, 2)    # (nj, E, tf)
    w1g = jnp.concatenate([w1b, wgb], axis=-1)         # (nj, E, 2*tf)
    return w1g, w2t


# ---------------------------------------------------------------------------
# Pallas kernel
# ---------------------------------------------------------------------------

def _glu_ffn_kernel(x_ref, w1g_ref, w2t_ref, o_ref, acc_ref, *, act_name, tf):
    # Grid: (i over M tiles, j over F tiles). j is the reduction axis of the
    # second matmul; the output tile / acc_ref stay resident across j.
    j = pl.program_id(1)

    @pl.when(j == 0)
    def _():
        acc_ref[...] = jnp.zeros_like(acc_ref)

    x = x_ref[...]                                          # (tm, E) compute dtype
    w1g = w1g_ref[0]                                        # (E, 2*tf)
    # One MXU launch for fc1 + gate together.
    hg = jnp.dot(x, w1g, preferred_element_type=jnp.float32)  # (tm, 2*tf) f32
    h = hg[:, :tf]
    g = hg[:, tf:]

    a = _ACTS[act_name](h)                                  # f32 (EUP / VPU)
    gated = (a * g).astype(x.dtype)                         # single f32 mul, one cast

    acc_ref[...] += jnp.dot(gated, w2t_ref[...],
                            preferred_element_type=jnp.float32)  # (tm, E) f32

    @pl.when(j == pl.num_programs(1) - 1)
    def _():
        o_ref[...] = acc_ref[...].astype(o_ref.dtype)


# ---------------------------------------------------------------------------
# Wrapper
# ---------------------------------------------------------------------------

def glu_forward_pallas(x, w1g, w2t, activation="swish", compute_dtype=None):
    """Fused GLU FFN forward.

    x   : (..., E)
    w1g : (nj, E, 2*tf)  -- from pack_glu_weights
    w2t : (Fp, E)        -- from pack_glu_weights
    """
    if activation not in _ACTS:
        raise NotImplementedError(activation)

    orig_shape = x.shape
    orig_dtype = x.dtype
    E = orig_shape[-1]
    M = int(np.prod(orig_shape[:-1]))

    nj, e_w, two_tf = w1g.shape
    assert e_w == E, (e_w, E)
    tf = two_tf // 2
    Fp = nj * tf
    assert w2t.shape == (Fp, E), (w2t.shape, Fp, E)

    if compute_dtype is None:
        compute_dtype = w1g.dtype
    x2 = x.reshape(M, E).astype(compute_dtype)
    w1g = w1g.astype(compute_dtype)   # no-op if pre-cast at init
    w2t = w2t.astype(compute_dtype)

    x_bytes = jnp.dtype(compute_dtype).itemsize
    w_bytes = x_bytes
    out_bytes = jnp.dtype(orig_dtype).itemsize

    vmem_cap = _vmem_capacity_bytes()
    budget = int(0.75 * vmem_cap)     # leave headroom for compiler-internal scratch

    def fits(tm):
        return _vmem_footprint(tm, tf, E, x_bytes, w_bytes, out_bytes) <= budget

    # Row-tile choice: as large as VMEM allows (amortizes the weight re-stream),
    # aligned to 128/256 for full MXU feeds, but always >= 2 row tiles when
    # M > 128 so the "parallel" axis spans both v7x TensorCores.
    if M <= 128:
        tm = _round_up(M, 8)
    else:
        tm = 128
        for cand in (512, 256):
            if M >= 2 * cand and fits(cand):
                tm = cand
                break
    while tm > 8 and not fits(tm):
        tm = max(8, (tm // 2) // 8 * 8)
    # TODO(synk): if even tm=8 overflows the budget (E ~ 8k+ on v7x's 64 MiB),
    # split the E contraction of the first matmul instead of shrinking tm.

    Mp = _round_up(M, tm)
    if Mp != M:
        x2 = jnp.pad(x2, ((0, Mp - M), (0, 0)))   # zero rows -> exact, sliced off below

    grid = (Mp // tm, nj)

    fp = _vmem_footprint(tm, tf, E, x_bytes, w_bytes, out_bytes)
    vmem_limit = int(min(max(fp + (8 << 20), 32 << 20), vmem_cap))

    cost = pl.CostEstimate(
        flops=6 * Mp * E * Fp,                         # fc1+gate (4MEF) + fc2 (2MEF)
        transcendentals=Mp * Fp,                       # undercounts exact-erf gelu
        bytes_accessed=(Mp * E * (x_bytes + out_bytes)                 # x in, out
                        + grid[0] * 3 * E * Fp * w_bytes),             # weight re-stream
    )

    out2 = pl.pallas_call(
        functools.partial(_glu_ffn_kernel, act_name=activation, tf=tf),
        out_shape=jax.ShapeDtypeStruct((Mp, E), orig_dtype),
        grid_spec=pltpu.PrefetchScalarGridSpec(
            num_scalar_prefetch=0,
            grid=grid,
            in_specs=[
                pl.BlockSpec((tm, E), lambda i, j: (i, 0)),          # x rows
                pl.BlockSpec((1, E, 2 * tf), lambda i, j: (j, 0, 0)),  # packed [W1^T|Wg^T]
                pl.BlockSpec((tf, E), lambda i, j: (j, 0)),          # W2^T rows
            ],
            out_specs=pl.BlockSpec((tm, E), lambda i, j: (i, 0)),
            scratch_shapes=[pltpu.VMEM((tm, E), jnp.float32)],
        ),
        compiler_params=pltpu.CompilerParams(
            dimension_semantics=("parallel", "arbitrary"),
            vmem_limit_bytes=vmem_limit,
        ),
        cost_estimate=cost,
    )(x2, w1g, w2t)

    if Mp != M:
        out2 = out2[:M]
    return out2.reshape(orig_shape)


# ---------------------------------------------------------------------------
# Module wrapper (mirrors the PyTorch GLU; eval-mode dropout = identity)
# ---------------------------------------------------------------------------

class GLUPallas:
    def __init__(self, embed_dim, ffn_dim, activation_fn, dropout,
                 activation_dropout, key, compute_dtype=jnp.bfloat16):
        act = str(activation_fn)
        if act not in _ACTS:
            raise NotImplementedError(activation_fn)
        self.embed_dim = embed_dim
        self.ffn_dim = ffn_dim
        self.activation = act
        self.dropout = dropout                         # identity in eval mode
        self.activation_dropout = activation_dropout   # identity in eval mode
        self.compute_dtype = compute_dtype
        # TODO(synk): training-mode dropout would need pltpu.prng_seed /
        # pltpu.prng_random_bits plus an RNG-key contract with the caller.

        k1, k2, k3 = jax.random.split(key, 3)
        # nn.Linear default init: U(-1/sqrt(fan_in), 1/sqrt(fan_in))
        b1 = 1.0 / np.sqrt(embed_dim)
        b2 = 1.0 / np.sqrt(ffn_dim)
        self.w_fc1 = jax.random.uniform(k1, (ffn_dim, embed_dim), jnp.float32, -b1, b1)
        self.w_gate = jax.random.uniform(k2, (ffn_dim, embed_dim), jnp.float32, -b1, b1)
        self.w_fc2 = jax.random.uniform(k3, (embed_dim, ffn_dim), jnp.float32, -b2, b2)

        # Pre-transpose / pre-cast / pre-pack ONCE (no per-call HBM transposes;
        # bf16 halves both the weight stream and every VMEM tile).
        self.tf = _choose_tf(ffn_dim)
        self.w1g_packed, self.w2t = pack_glu_weights(
            self.w_fc1, self.w_gate, self.w_fc2, self.tf, compute_dtype)

    def forward(self, x):
        # eval-mode semantics: both dropout modules are identity.
        return glu_forward_pallas(x, self.w1g_packed, self.w2t,
                                  activation=self.activation,
                                  compute_dtype=self.compute_dtype)


# ---------------------------------------------------------------------------
# Plain-JAX reference for correctness check
# ---------------------------------------------------------------------------

def _reference_glu(x, w_fc1, w_gate, w_fc2, activation):
    x_shape = x.shape
    x2 = x.reshape(-1, x_shape[-1])
    g = x2 @ w_gate.T
    h = x2 @ w_fc1.T
    a = _ACTS[activation](h.astype(jnp.float32)).astype(x.dtype) * g
    out = a @ w_fc2.T
    return out.reshape(x_shape)


if __name__ == "__main__":
    key = jax.random.PRNGKey(0)
    kx, kw = jax.random.split(key)

    batch, seq = 2, 8
    embed_dim, ffn_dim = 32, 64

    x = jax.random.normal(kx, (batch, seq, embed_dim), dtype=jnp.float32)

    # 1) f32 compute path: matches the torch f32 reference tightly.
    mod_f32 = GLUPallas(embed_dim, ffn_dim, "swish", dropout=0.0,
                        activation_dropout=0.0, key=kw,
                        compute_dtype=jnp.float32)
    out = mod_f32.forward(x)
    jax.block_until_ready(out)

    ref = _reference_glu(x, mod_f32.w_fc1, mod_f32.w_gate, mod_f32.w_fc2, "swish")
    jax.block_until_ready(ref)

    assert out.shape == x.shape
    err_f32 = float(np.max(np.abs(np.asarray(out) - np.asarray(ref))))
    assert err_f32 < 1e-3, f"f32 mismatch: max abs err = {err_f32:g}"

    # 2) bf16 compute path (perf default): looser tolerance.
    mod_bf16 = GLUPallas(embed_dim, ffn_dim, "swish", dropout=0.0,
                         activation_dropout=0.0, key=kw,
                         compute_dtype=jnp.bfloat16)
    out_bf = mod_bf16.forward(x)
    jax.block_until_ready(out_bf)
    assert out_bf.shape == x.shape and out_bf.dtype == x.dtype
    err_bf = float(np.max(np.abs(np.asarray(out_bf, dtype=np.float32)
                                 - np.asarray(ref, dtype=np.float32))))
    tol_bf = 0.05 * (float(np.max(np.abs(np.asarray(ref)))) + 1.0)
    assert err_bf < tol_bf, f"bf16 mismatch: max abs err = {err_bf:g} (tol {tol_bf:g})"

    print("KERNEL_OK")
</pallas_src>

<mosaic_0001>
module attributes {stable_mosaic.version = 11 : i64} {
  func.func @_glu_ffn_kernel(%arg0: i32, %arg1: i32, %arg2: memref<16x32xf32, #tpu.memory_space<vmem>>, %arg3: memref<1x32x128xf32, #tpu.memory_space<vmem>>, %arg4: memref<64x32xf32, #tpu.memory_space<vmem>>, %arg5: memref<16x32xf32, #tpu.memory_space<vmem>>, %arg6: memref<16x32xf32, #tpu.memory_space<vmem>>) attributes {dimension_semantics = [#tpu.dimension_semantics<parallel>, #tpu.dimension_semantics<arbitrary>], iteration_bounds = array<i64: 1, 1>, scalar_prefetch = 0 : i64, scratch_operands = 1 : i64, tpu.core_type = #tpu.core_type<tc>, window_params = [{transform_indices = @transform_0, window_bounds = array<i64: 16, 32>}, {transform_indices = @transform_1, window_bounds = array<i64: 1, 32, 128>}, {transform_indices = @transform_2, window_bounds = array<i64: 64, 32>}, {transform_indices = @transform_3, window_bounds = array<i64: 16, 32>}]} {
    %c0_i32 = arith.constant 0 : i32
    %0 = arith.cmpi eq, %arg1, %c0_i32 : i32
    %1 = arith.extui %0 : i1 to i32
    %c0_i32_0 = arith.constant 0 : i32
    %2 = arith.cmpi ne, %1, %c0_i32_0 : i32
    scf.if %2 {
      %cst_15 = arith.constant 0.000000e+00 : f32
      %24 = vector.broadcast %cst_15 : f32 to vector<16x32xf32>
      %c0_16 = arith.constant 0 : index
      %c0_17 = arith.constant 0 : index
      %25 = vector.load %arg6[%c0_16, %c0_17] : memref<16x32xf32, #tpu.memory_space<vmem>>, vector<16x32xf32>
      tpu.vector_store %arg6[%c0_16, %c0_17], %24 {strides = array<i32>} : memref<16x32xf32, #tpu.memory_space<vmem>>, vector<16x32xf32>,
    } else {
    }
    %c0 = arith.constant 0 : index
    %c0_1 = arith.constant 0 : index
    %3 = vector.load %arg2[%c0, %c0_1] : memref<16x32xf32, #tpu.memory_space<vmem>>, vector<16x32xf32>
    %c0_2 = arith.constant 0 : index
    %c0_3 = arith.constant 0 : index
    %c0_4 = arith.constant 0 : index
    %4 = vector.load %arg3[%c0_2, %c0_3, %c0_4] : memref<1x32x128xf32, #tpu.memory_space<vmem>>, vector<1x32x128xf32>
    %5 = vector.shape_cast %4 : vector<1x32x128xf32> to vector<32x128xf32>
    %cst = arith.constant dense<0.000000e+00> : vector<16x128xf32>
    %6 = tpu.matmul %3, %5, %cst {dimension_numbers = #tpu.dot_dimension_numbers<[1], [0], [0], [1], [0, 0, 1, 1], [], []>} : vector<16x32xf32>, vector<32x128xf32>, vector<16x128xf32> -> vector<16x128xf32>
    %7 = vector.extract_strided_slice %6 {offsets = [0, 0], sizes = [16, 64], strides = [1, 1]} : vector<16x128xf32> to vector<16x64xf32>
    %8 = vector.extract_strided_slice %6 {offsets = [0, 64], sizes = [16, 64], strides = [1, 1]} : vector<16x128xf32> to vector<16x64xf32>
    %9 = arith.negf %7 : vector<16x64xf32>
    %10 = math.exp %9 : vector<16x64xf32>
    %cst_5 = arith.constant 1.000000e+00 : f32
    %11 = vector.broadcast %cst_5 : f32 to vector<16x64xf32>
    %12 = arith.addf %11, %10 : vector<16x64xf32>
    %13 = arith.divf %11, %12 : vector<16x64xf32>
    %14 = arith.mulf %7, %13 : vector<16x64xf32>
    %15 = arith.mulf %14, %8 : vector<16x64xf32>
    %c0_6 = arith.constant 0 : index
    %c0_7 = arith.constant 0 : index
    %16 = vector.load %arg6[%c0_6, %c0_7] : memref<16x32xf32, #tpu.memory_space<vmem>>, vector<16x32xf32>
    %c0_8 = arith.constant 0 : index
    %c0_9 = arith.constant 0 : index
    %17 = vector.load %arg4[%c0_8, %c0_9] : memref<64x32xf32, #tpu.memory_space<vmem>>, vector<64x32xf32>
    %cst_10 = arith.constant dense<0.000000e+00> : vector<16x32xf32>
    %18 = tpu.matmul %15, %17, %cst_10 {dimension_numbers = #tpu.dot_dimension_numbers<[1], [0], [0], [1], [0, 0, 1, 1], [], []>} : vector<16x64xf32>, vector<64x32xf32>, vector<16x32xf32> -> vector<16x32xf32>
    %19 = arith.addf %16, %18 : vector<16x32xf32>
    %c0_11 = arith.constant 0 : index
    %c0_12 = arith.constant 0 : index
    %20 = vector.load %arg6[%c0_11, %c0_12] : memref<16x32xf32, #tpu.memory_space<vmem>>, vector<16x32xf32>
    tpu.vector_store %arg6[%c0_11, %c0_12], %19 {strides = array<i32>} : memref<16x32xf32, #tpu.memory_space<vmem>>, vector<16x32xf32>,
    %c0_i32_13 = arith.constant 0 : i32
    %21 = arith.cmpi eq, %arg1, %c0_i32_13 : i32
    %22 = arith.extui %21 : i1 to i32
    %c0_i32_14 = arith.constant 0 : i32
    %23 = arith.cmpi ne, %22, %c0_i32_14 : i32
    scf.if %23 {
      %c0_15 = arith.constant 0 : index
      %c0_16 = arith.constant 0 : index
      %24 = vector.load %arg6[%c0_15, %c0_16] : memref<16x32xf32, #tpu.memory_space<vmem>>, vector<16x32xf32>
      %c0_17 = arith.constant 0 : index
      %c0_18 = arith.constant 0 : index
      %25 = vector.load %arg5[%c0_17, %c0_18] : memref<16x32xf32, #tpu.memory_space<vmem>>, vector<16x32xf32>
      tpu.vector_store %arg5[%c0_17, %c0_18], %24 {strides = array<i32>} : memref<16x32xf32, #tpu.memory_space<vmem>>, vector<16x32xf32>,
    } else {
    }
    return
  }
  func.func @transform_0(%arg0: i32, %arg1: i32) -> (i32, i32) {
    %c0_i32 = arith.constant 0 : i32
    %c0_i32_0 = arith.constant 0 : i32
    return %arg0, %c0_i32 : i32, i32
  }
  func.func @transform_1(%arg0: i32, %arg1: i32) -> (i32, i32, i32) {
    %c0_i32 = arith.constant 0 : i32
    %c0_i32_0 = arith.constant 0 : i32
    %c0_i32_1 = arith.constant 0 : i32
    return %arg1, %c0_i32, %c0_i32_0 : i32, i32, i32
  }
  func.func @transform_2(%arg0: i32, %arg1: i32) -> (i32, i32) {
    %c0_i32 = arith.constant 0 : i32
    %c0_i32_0 = arith.constant 0 : i32
    return %arg1, %c0_i32 : i32, i32
  }
  func.func @transform_3(%arg0: i32, %arg1: i32) -> (i32, i32) {
    %c0_i32 = arith.constant 0 : i32
    %c0_i32_0 = arith.constant 0 : i32
    return %arg0, %c0_i32 : i32, i32
  }
}

</mosaic_0001>

<bundles_post_ra>
// kernel: tpu_custom_call.1
= control target key start
LH: loop header
LB: loop body
LE: loop exit
PB: predicated region body
PF: predicated region fallthrough
CT: control target
= control target key end

     0   :  { %vm19_vm0 = vcmask 261120   ;;  %s453_s0 = inlined_call_operand.vmem [shape: f32[16,32], index: 0, kind: input, shape index: {}]   ;;  %s454_s1 = inlined_call_operand.vmem [shape: f32[1,32,128], index: 1, kind: input, shape index: {}]   ;;  %s455_s2 = inlined_call_operand.vmem [shape: f32[64,32], index: 2, kind: input, shape index: {}]   ;;  %s456_s3 = inlined_call_operand.hbm [shape: f32[16,32], index: 3, kind: output, shape index: {}]  }
   0x1   :  { %v24_v0 = vld [vmem:[%s454_s1] sm:$0xff]  ;;  %v25_v1 = vld [vmem:[%s454_s1 + $0x8] sm:$0xff]  ;;  %v26_v2 = vld [vmem:[%s454_s1 + $0x10] sm:$0xff] }
   0x2   :  { %v305_v3 = vpack.c.bf16 %v25_v1, %v24_v0  ;;  %v27_v4 = vld [vmem:[%s454_s1 + $0x18] sm:$0xff]  ;;  %v22_v5 = vld [vmem:[%s453_s0] sm:$0xff] }
   0x3   :  { %v309_v6 = vpack.c.bf16 %v27_v4, %v26_v2  ;;  %283 = vmatprep.mubr.msk.f32.mxu0 %vm19_vm0, %v22_v5 }
   0x4   :  { %8 = vsyncpa [#allocation4], 0  ;;  %306 = vmatprep.subr.bf16.mxu0 %v305_v3  ;;  %v23_v7 = vld [vmem:[%s453_s0 + $0x8] sm:$0xff]  ;;  %v136_v8 = vld [vmem:[%s455_s2] sm:$0xff]  ;;  %v366_v20 = vmov 0.0   ;;  %s367_s11 = smov 64  }
   0x5   :  { %308 = vmatpush3.bf16.msra.mxu0 %v305_v3  ;;  %v137_v9 = vld [vmem:[%s455_s2 + $0x8] sm:$0xff]  ;;  %v138_v10 = vld [vmem:[%s455_s2 + $0x10] sm:$0xff]  ;;  %v139_v12 = vld [vmem:[%s455_s2 + $0x18] sm:$0xff]  ;;  %21 = vst.msk [vmem:[#allocation2 + $0x8] sm:$0xff] %vm19_vm0, %v366_v20  ;;  %vm144_vm1 = vcmask 523264  }
   0x6   :  { %310 = vmatprep.subr.bf16.mxu0 %v309_v6  ;;  %v313_v11 = vpack.c.bf16 %v137_v9, %v136_v8  ;;  %v317_v13 = vpack.c.bf16 %v139_v12, %v138_v10  ;;  %v140_v14 = vld [vmem:[%s455_s2 + $0x20] sm:$0xff]  ;;  %v141_v15 = vld [vmem:[%s455_s2 + $0x28] sm:$0xff]  ;;  %v142_v17 = vld [vmem:[%s455_s2 + $0x30] sm:$0xff]  ;;  %20 = vst.msk [vmem:[#allocation2] sm:$0xff] %vm19_vm0, %v366_v20 }
   0x7   :  { %v321_v16 = vpack.c.bf16 %v141_v15, %v140_v14  ;;  %v143_v18 = vld [vmem:[%s455_s2 + $0x38] sm:$0xff]  ;;  %s368_s2 = smov [#allocation3]  }
   0x8   :  { %314 = vmatprep.subr.bf16.mxu1 %v313_v11  ;;  %v325_v19 = vpack.c.bf16 %v143_v18, %v142_v17  ;;  %s242_s12 = sshll.u32 %s368_s2, 4  ;;  %s243_s12 = int_to_ptr.vmem [resolvable:$true] %s242_s12 }
   0x9   :  { %312 = vmatpush3.bf16.msra.mxu0 %v309_v6  ;;  %316 = vmatpush3.bf16.msra.mxu1 %v313_v11  ;;  %s342_s13 = scalar_lea.vmem %s243_s12, 256  ;;  %p347_p1 = scmp.lt.s32.totalorder %s243_s12, %s243_s12 }
   0xa   :  { %318 = vmatprep.subr.bf16.mxu1 %v317_v13  ;;  %p343_p0 = scmp.ne.s32.totalorder %s243_s12, %s342_s13  ;;  %p348_p2 = scmp.lt.s32.totalorder %s342_s13, %s342_s13 }
   0xc   :  { %284 = vmatmul.mubr.msk.f32.vlgmr.msra.gmra.mrb[0].mxu0 %vm19_vm0, %v23_v7  ;;  %v135_v37 = vld [vmem:[#allocation2 + $0x8] sm:$0xff]  ;;  %p349_p3 = por %p348_p2, %p347_p1 }
   0xd   :  { %320 = vmatpush3.bf16.msra.mxu1 %v317_v13  ;;  %v134_v38 = vld [vmem:[#allocation2] sm:$0xff] }
   0xe   :  { %322 = vmatprep.subr.bf16.mxu1 %v321_v16  ;;  %p350_p4 = pnand %p349_p3, %p343_p0 }
  0x11   :  { %324 = vmatpush3.bf16.msra.mxu1 %v321_v16 }
  0x12   :  { %326 = vmatprep.subr.bf16.mxu1 %v325_v19 }
  0x15   :  { %328 = vmatpush3.bf16.msra.mxu1 %v325_v19 }
  0xdf   :  { %v285_v21 = vpop.f32.mrb[0].mxu0 }
  0xe0   :  { %v101_v22 = vpop.f32.mrb[1].mxu0  ;;  %v256_v24 = vmul.f32 -1.442695, %v285_v21 }
  0xe1   :  { %126 = vrot.lane.b32.xlu0 %v101_v22, %s367_s11  ;;  %v255_v23 = vmul.f32 -1.442695, %v101_v22 }
  0xe3   :  { %334 = vpow2.f32 %v255_v23 }
  0xe4   :  { %336 = vpow2.f32 %v256_v24 }
  0xe5   :  { %128 = vrot.lane.b32.xlu0 %v285_v21, %s367_s11 }
  0xed   :  { %v335_v25 = vpop.eup %334 }
  0xee   :  { %v116_v26 = vadd.f32 1.0, %v335_v25  ;;  %v337_v27 = vpop.eup %336 }
  0xef   :  { %v117_v28 = vadd.f32 1.0, %v337_v27 }
  0xf0   :  { %338 = vrcp.f32 %v116_v26 }
  0xf1   :  { %340 = vrcp.f32 %v117_v28 }
  0xfa   :  { %v339_v29 = vpop.eup %338 }
  0xfb   :  { %v122_v30 = vmul.f32 %v339_v29, %v101_v22  ;;  %v341_v31 = vpop.eup %340 }
  0xfc   :  { %v123_v34 = vmul.f32 %v341_v31, %v285_v21 }
 0x153   :  { %v127_v32 = vpop.permute.xlu0 %126 }
 0x154   :  { %v132_v33 = vmul.f32 %v127_v32, %v122_v30 }
 0x156   :  { %302 = vmatprep.mubr.msk.f32.mxu1 %vm144_vm1, %v132_v33 }
 0x157   :  { %v129_v35 = vpop.permute.xlu0 %128 }
 0x158   :  { %v133_v36 = vmul.f32 %v129_v35, %v123_v34 }
 0x15a   :  { %303 = vmatmul.mubr.msk.f32.vlgmr.msra.gmra.mrb[0].mxu1 %vm144_vm1, %v133_v36 }
 0x22d   :  { %v304_v39 = vpop.f32.mrb[0].mxu1 }
 0x22e   :  { %v227_v40 = vadd.f32 %v304_v39, %v135_v37  ;;  %v217_v41 = vpop.f32.mrb[1].mxu1 }
 0x22f   :  { %v226_v42 = vadd.f32 %v217_v41, %v134_v38 }
 0x230   :  { %229 = vst.msk [vmem:[#allocation2 + $0x8] sm:$0xff] %vm19_vm0, %v227_v40 }
 0x231   :  { %228 = vst.msk [vmem:[#allocation2] sm:$0xff] %vm19_vm0, %v226_v42 }
 0x237   :  { %v234_v43 = vld [vmem:[#allocation2 + $0x8] sm:$0xff] }
 0x238   :  { %v233_v44 = vld [vmem:[#allocation2] sm:$0xff]  ;;  %236 = vst.msk [vmem:[#allocation3 + $0x8] sm:$0xff] %vm19_vm0, %v234_v43 }
 0x239   :  { %235 = vst.msk [vmem:[#allocation3] sm:$0xff] %vm19_vm0, %v233_v44 }
 0x23a   :  { %353 = shalt.err (!%p350_p4)
}
 0x23b   :  { %s354_s16 = scalar_lea.hbm %s456_s3, 256 }
 0x23c   :  { %p355_p5 = scmp.ne.s32.totalorder %s456_s3, %s354_s16  ;;  %p358_p6 = scmp.lt.u32.totalorder %s354_s16, %s456_s3 }
 0x23e   :  { %p360_p7 = pnand %p358_p6, %p355_p5 }
 0x240   :  { %363 = shalt.err (!%p360_p7)
}
 0x241   :  { %s369_s21 = smov 128   ;;  %s370_s22 = smov 8  }
 0x242   :  { %248 = dma.vmem_to_hbm [thread:$0]  %s243_s12, 256, %s456_s3, [#allocation4], %s369_s21, %s369_s21, %s370_s22  }
 0x243   :  { %364 = dma.done.wait [#allocation4], 256  }
 0x244   :  { %365 = vsyncadd [#allocation4], 4294967040 }
 0x245   :  { %252 = vsyncpa [#allocation4], 1 }

</bundles_post_ra>
